<compile_context>
chip_gen: v7x
topology: tpu7x:2x2x1
jax: 0.10.0
libtpu: 0.0.40
codegen_flags: <defaults>
</compile_context>

<pallas_src>
import functools
import math

import jax
import jax.numpy as jnp
from jax import lax
from jax.experimental import pallas as pl
from jax.experimental.pallas import tpu as pltpu


# ----------------------------------------------------------------------------
# Tile selection helper: largest tile <= pref that is a multiple of `align`
# and evenly divides `dim`; falls back to the full dimension.
# ----------------------------------------------------------------------------
def _pick_tile(dim, pref, align):
    if dim <= pref:
        return dim
    t = (pref // align) * align
    while t >= align:
        if dim % t == 0:
            return t
        t -= align
    return dim


# ----------------------------------------------------------------------------
# Kernel 1: tiled dense layer  y = x @ W + b
#   Multi-K-tile variant: grid = (M/TM, N/TN, K/TK), f32 VMEM accumulator.
#   Single-K-tile variant: grid = (M/TM, N/TN), direct fused store.
# ----------------------------------------------------------------------------
def _linear_kernel_acc(x_ref, w_ref, b_ref, o_ref, acc_ref):
    @pl.when(pl.program_id(2) == 0)
    def _():
        acc_ref[...] = jnp.zeros(acc_ref.shape, acc_ref.dtype)

    acc_ref[...] += jnp.dot(x_ref[...], w_ref[...],
                            preferred_element_type=jnp.float32)

    @pl.when(pl.program_id(2) == pl.num_programs(2) - 1)
    def _():
        o_ref[...] = (acc_ref[...] + b_ref[...].astype(jnp.float32)).astype(o_ref.dtype)


def _linear_kernel_single_k(x_ref, w_ref, b_ref, o_ref):
    acc = jnp.dot(x_ref[...], w_ref[...], preferred_element_type=jnp.float32)
    o_ref[...] = (acc + b_ref[...].astype(jnp.float32)).astype(o_ref.dtype)


def linear(x, w, b, *, out_dtype=None, tm=512, tn=512, tk=512):
    """x: (M, K), w: (K, N), b: (1, N) -> (M, N)."""
    M, K = x.shape
    K2, N = w.shape
    assert K == K2 and b.shape == (1, N)
    if out_dtype is None:
        out_dtype = x.dtype

    TM = _pick_tile(M, tm, 8)
    TN = _pick_tile(N, tn, 128)
    TK = _pick_tile(K, tk, 128)

    cost = pl.CostEstimate(
        flops=2 * M * N * K,
        transcendentals=0,
        bytes_accessed=(M * K * x.dtype.itemsize
                        + K * N * w.dtype.itemsize
                        + N * b.dtype.itemsize
                        + M * N * jnp.dtype(out_dtype).itemsize),
    )

    if TK == K:
        # Whole K fits in one tile: fused kernel, no accumulator round-trip.
        return pl.pallas_call(
            _linear_kernel_single_k,
            out_shape=jax.ShapeDtypeStruct((M, N), out_dtype),
            grid=(M // TM, N // TN),
            in_specs=[
                pl.BlockSpec((TM, TK), lambda i, j: (i, 0)),
                pl.BlockSpec((TK, TN), lambda i, j: (0, j)),
                pl.BlockSpec((1, TN), lambda i, j: (0, j)),
            ],
            out_specs=pl.BlockSpec((TM, TN), lambda i, j: (i, j)),
            compiler_params=pltpu.CompilerParams(
                dimension_semantics=("parallel", "parallel")),
            cost_estimate=cost,
        )(x, w, b)

    return pl.pallas_call(
        _linear_kernel_acc,
        out_shape=jax.ShapeDtypeStruct((M, N), out_dtype),
        grid=(M // TM, N // TN, K // TK),
        in_specs=[
            pl.BlockSpec((TM, TK), lambda i, j, k: (i, k)),
            pl.BlockSpec((TK, TN), lambda i, j, k: (k, j)),
            pl.BlockSpec((1, TN), lambda i, j, k: (0, j)),
        ],
        out_specs=pl.BlockSpec((TM, TN), lambda i, j, k: (i, j)),
        scratch_shapes=[pltpu.VMEM((TM, TN), jnp.float32)],
        compiler_params=pltpu.CompilerParams(
            dimension_semantics=("parallel", "parallel", "arbitrary")),
        cost_estimate=cost,
    )(x, w, b)


# ----------------------------------------------------------------------------
# Kernel 2: flash-style multi-head attention.
#   Layout (B, S, D) with D = H*d_k (lane-dense), grid = (B, Sq/TQ, Sk/TK),
#   K/V streamed over the last ("arbitrary") axis with online softmax.
#   The mask input is optional (has_mask static flag selects the variant).
# ----------------------------------------------------------------------------
def _attention_kernel(*args, num_heads, d_k, scale, has_mask):
    if has_mask:
        q_ref, k_ref, v_ref, mask_ref, o_ref, m_sc, l_sc, acc_sc = args
    else:
        q_ref, k_ref, v_ref, o_ref, m_sc, l_sc, acc_sc = args
        mask_ref = None

    kv = pl.program_id(2)

    @pl.when(kv == 0)
    def _():
        m_sc[...] = jnp.full(m_sc.shape, -jnp.inf, m_sc.dtype)
        l_sc[...] = jnp.zeros(l_sc.shape, l_sc.dtype)
        acc_sc[...] = jnp.zeros(acc_sc.shape, acc_sc.dtype)

    q = q_ref[0]                                   # (TQ, D)
    k = k_ref[0]                                   # (TK, D)
    v = v_ref[0]                                   # (TK, D)
    masked = jnp.isneginf(mask_ref[0]) if has_mask else None   # (TQ, TK), True = disallowed

    for h in range(num_heads):
        lo = h * d_k
        qh = q[:, lo:lo + d_k]                     # (TQ, d_k)
        kh = k[:, lo:lo + d_k]                     # (TK, d_k)
        vh = v[:, lo:lo + d_k]                     # (TK, d_k)

        # scores = (q @ k^T) / sqrt(d_k) without materializing k^T
        s = lax.dot_general(qh, kh, (((1,), (1,)), ((), ())),
                            preferred_element_type=jnp.float32) * scale
        if has_mask:
            s = jnp.where(masked, jnp.float32(-1e9), s)   # masked_fill(-inf -> -1e9)

        m_prev = m_sc[h]                                  # (TQ, 1)
        m_new = jnp.maximum(m_prev, jnp.max(s, axis=-1, keepdims=True))
        alpha = jnp.exp(m_prev - m_new)
        p = jnp.exp(s - m_new)                            # (TQ, TK), f32
        l_sc[h] = alpha * l_sc[h] + jnp.sum(p, axis=-1, keepdims=True)
        acc_sc[h] = alpha * acc_sc[h] + lax.dot_general(
            p.astype(vh.dtype), vh, (((1,), (0,)), ((), ())),
            preferred_element_type=jnp.float32)
        m_sc[h] = m_new

    @pl.when(kv == pl.num_programs(2) - 1)
    def _():
        parts = []
        for h in range(num_heads):
            inv_l = pl.reciprocal(l_sc[h], approx=True)   # EUP slot, nearly free
            parts.append(acc_sc[h] * inv_l)
        # single lane-dense store of all heads (TQ, H*d_k)
        o_ref[0] = jnp.concatenate(parts, axis=-1).astype(o_ref.dtype)


def attention(q, k, v, mask3, num_heads, *, out_dtype=None, tq=256, tk=256):
    """q: (B, Sq, D), k/v: (B, Sk, D), mask3: (B, Sq, Sk) f32 (-inf = disallowed) or None."""
    B, Sq, D = q.shape
    Sk = k.shape[1]
    d_k = D // num_heads
    scale = 1.0 / math.sqrt(d_k)
    has_mask = mask3 is not None
    if out_dtype is None:
        out_dtype = q.dtype

    TQ = _pick_tile(Sq, tq, 8)
    TK = _pick_tile(Sk, tk, 128)   # TK is the lane dim of the mask / score block
    grid = (B, Sq // TQ, Sk // TK)

    kernel = functools.partial(_attention_kernel, num_heads=num_heads,
                               d_k=d_k, scale=scale, has_mask=has_mask)

    mask_bytes = mask3.size * mask3.dtype.itemsize if has_mask else 0
    cost = pl.CostEstimate(
        flops=4 * B * num_heads * Sq * Sk * d_k,
        transcendentals=B * num_heads * Sq * Sk,
        bytes_accessed=(q.size * q.dtype.itemsize
                        + k.size * k.dtype.itemsize
                        + v.size * v.dtype.itemsize
                        + mask_bytes
                        + B * Sq * D * jnp.dtype(out_dtype).itemsize),
    )

    in_specs = [
        pl.BlockSpec((1, TQ, D), lambda b, i, kv: (b, i, 0)),
        pl.BlockSpec((1, TK, D), lambda b, i, kv: (b, kv, 0)),
        pl.BlockSpec((1, TK, D), lambda b, i, kv: (b, kv, 0)),
    ]
    operands = [q, k, v]
    if has_mask:
        in_specs.append(pl.BlockSpec((1, TQ, TK), lambda b, i, kv: (b, i, kv)))
        operands.append(mask3)

    return pl.pallas_call(
        kernel,
        out_shape=jax.ShapeDtypeStruct((B, Sq, D), out_dtype),
        grid=grid,
        in_specs=in_specs,
        out_specs=pl.BlockSpec((1, TQ, D), lambda b, i, kv: (b, i, 0)),
        scratch_shapes=[
            pltpu.VMEM((num_heads, TQ, 1), jnp.float32),    # running max
            pltpu.VMEM((num_heads, TQ, 1), jnp.float32),    # running denom
            pltpu.VMEM((num_heads, TQ, d_k), jnp.float32),  # running numerator
        ],
        compiler_params=pltpu.CompilerParams(
            dimension_semantics=("parallel", "parallel", "arbitrary")),
        cost_estimate=cost,
    )(*operands)


# ----------------------------------------------------------------------------
# Parameters (nn.Linear-style init) + fused QKV weight
# ----------------------------------------------------------------------------
def init_params(key, d_model):
    keys = jax.random.split(key, 8)
    bound = 1.0 / math.sqrt(d_model)

    def lin(kw, kb):
        w = jax.random.uniform(kw, (d_model, d_model), jnp.float32, -bound, bound)
        b = jax.random.uniform(kb, (1, d_model), jnp.float32, -bound, bound)
        return w, b

    wq, bq = lin(keys[0], keys[1])
    wk, bk = lin(keys[2], keys[3])
    wv, bv = lin(keys[4], keys[5])
    wo, bo = lin(keys[6], keys[7])
    return dict(
        wq=wq, bq=bq, wk=wk, bk=bk, wv=wv, bv=bv, wo=wo, bo=bo,
        # pre-fused QKV projection (used when query is key is value)
        wqkv=jnp.concatenate([wq, wk, wv], axis=1),
        bqkv=jnp.concatenate([bq, bk, bv], axis=1),
    )


# ----------------------------------------------------------------------------
# MultiHeadAttention forward
# ----------------------------------------------------------------------------
def multi_head_attention(params, query, key, value, mask, num_heads,
                         compute_dtype=jnp.bfloat16):
    """
    query: (Sq, B, D)   key/value: (Sk, B, D)   mask: (B, 1, Sq, Sk) or None
    returns (Sq, B, D) in query.dtype.  `compute_dtype` is the MXU operand
    dtype (softmax / accumulation stay f32).
    """
    Sq, B, D = query.shape
    Sk = key.shape[0]
    assert D % num_heads == 0
    out_dtype = query.dtype
    cd = compute_dtype

    # (S, B, D) -> batch-major (B*S, D)
    q_in = jnp.transpose(query, (1, 0, 2)).reshape(B * Sq, D).astype(cd)

    if (query is key) and (key is value):
        # self-attention: fused QKV projection, reads the activation once
        qkv = linear(q_in, params["wqkv"].astype(cd), params["bqkv"], out_dtype=cd)
        q, k, v = qkv[:, :D], qkv[:, D:2 * D], qkv[:, 2 * D:]
    else:
        k_in = jnp.transpose(key, (1, 0, 2)).reshape(B * Sk, D).astype(cd)
        v_in = jnp.transpose(value, (1, 0, 2)).reshape(B * Sk, D).astype(cd)
        q = linear(q_in, params["wq"].astype(cd), params["bq"], out_dtype=cd)
        k = linear(k_in, params["wk"].astype(cd), params["bk"], out_dtype=cd)
        v = linear(v_in, params["wv"].astype(cd), params["bv"], out_dtype=cd)

    q = q.reshape(B, Sq, D)
    k = k.reshape(B, Sk, D)
    v = v.reshape(B, Sk, D)

    if mask is None:
        mask3 = None                       # maskless kernel variant (no mask HBM stream)
    else:
        mask3 = jnp.broadcast_to(mask, (B, 1, Sq, Sk)).reshape(B, Sq, Sk).astype(jnp.float32)

    # flash attention; output stays lane-dense (B, Sq, D) with heads folded in
    ctx = attention(q, k, v, mask3, num_heads, out_dtype=cd)

    out = linear(ctx.reshape(B * Sq, D),
                 params["wo"].astype(cd), params["bo"], out_dtype=out_dtype)
    return jnp.transpose(out.reshape(B, Sq, D), (1, 0, 2))   # (Sq, B, D)


# ----------------------------------------------------------------------------
# Pure-JAX reference (mirrors the PyTorch module) for correctness checks
# ----------------------------------------------------------------------------
def reference_mha(params, query, key, value, mask, num_heads):
    Sq, B, D = query.shape
    Sk = key.shape[0]
    d_k = D // num_heads

    def lin(x, w, b):
        return x @ w + b

    q = lin(query, params["wq"], params["bq"]).reshape(Sq, B, num_heads, d_k).transpose(1, 2, 0, 3)
    k = lin(key, params["wk"], params["bk"]).reshape(Sk, B, num_heads, d_k).transpose(1, 2, 0, 3)
    v = lin(value, params["wv"], params["bv"]).reshape(Sk, B, num_heads, d_k).transpose(1, 2, 0, 3)
    scores = jnp.einsum("bhqd,bhkd->bhqk", q, k) / math.sqrt(d_k)
    if mask is not None:
        scores = jnp.where(jnp.isneginf(mask), jnp.float32(-1e9), scores)
    attn = jax.nn.softmax(scores, axis=-1)
    ctx = jnp.einsum("bhqk,bhkd->bhqd", attn, v)
    ctx = ctx.transpose(2, 0, 1, 3).reshape(Sq, B, D)
    return lin(ctx, params["wo"], params["bo"])


if __name__ == "__main__":
    d_model = 32
    num_heads = 4
    q_seq = 8
    k_seq = 8
    batch = 2

    root = jax.random.PRNGKey(0)
    k_par, k_q, k_k, k_v, k_x = jax.random.split(root, 5)

    params = init_params(k_par, d_model)

    # Causal mask in the reference convention: 0 where allowed, -inf where disallowed.
    causal = jnp.tril(jnp.ones((q_seq, k_seq), jnp.float32))
    mask = jnp.where(causal > 0, 0.0, -jnp.inf)
    mask = jnp.broadcast_to(mask[None, None, :, :], (batch, 1, q_seq, k_seq))

    x = jax.random.normal(k_x, (q_seq, batch, d_model), jnp.float32)
    query = jax.random.normal(k_q, (q_seq, batch, d_model), jnp.float32)
    key = jax.random.normal(k_k, (k_seq, batch, d_model), jnp.float32)
    value = jax.random.normal(k_v, (k_seq, batch, d_model), jnp.float32)

    # 1) self-attention, f32 compute, with mask: fused-QKV + masked flash path, checked vs ref.
    out_self = multi_head_attention(params, x, x, x, mask, num_heads,
                                    compute_dtype=jnp.float32)
    ref_self = reference_mha(params, x, x, x, mask, num_heads)

    # 2) cross-attention, f32 compute, NO mask: separate projections + maskless flash path.
    out_cross = multi_head_attention(params, query, key, value, None, num_heads,
                                     compute_dtype=jnp.float32)
    ref_cross = reference_mha(params, query, key, value, None, num_heads)

    # 3) self-attention, bf16 MXU operands, with mask: exercises the bf16 path.
    out_bf16 = multi_head_attention(params, x, x, x, mask, num_heads,
                                    compute_dtype=jnp.bfloat16)

    out_self, out_cross, out_bf16, ref_self, ref_cross = jax.block_until_ready(
        (out_self, out_cross, out_bf16, ref_self, ref_cross))

    assert out_self.shape == (q_seq, batch, d_model)
    assert out_cross.shape == (q_seq, batch, d_model)
    assert out_bf16.shape == (q_seq, batch, d_model)
    assert bool(jnp.all(jnp.isfinite(out_bf16)))

    err_self = float(jnp.max(jnp.abs(out_self - ref_self)))
    err_cross = float(jnp.max(jnp.abs(out_cross - ref_cross)))
    assert err_self < 2e-2, f"self-attn max abs error vs reference: {err_self}"
    assert err_cross < 2e-2, f"cross-attn max abs error vs reference: {err_cross}"
    print("KERNEL_OK")
</pallas_src>

<mosaic_0001>
module attributes {stable_mosaic.version = 11 : i64} {
  func.func @_linear_kernel_single_k(%arg0: i32, %arg1: i32, %arg2: memref<16x32xf32, #tpu.memory_space<vmem>>, %arg3: memref<32x96xf32, #tpu.memory_space<vmem>>, %arg4: memref<1x96xf32, #tpu.memory_space<vmem>>, %arg5: memref<16x96xf32, #tpu.memory_space<vmem>>) attributes {dimension_semantics = [#tpu.dimension_semantics<parallel>, #tpu.dimension_semantics<parallel>], iteration_bounds = array<i64: 1, 1>, scalar_prefetch = 0 : i64, scratch_operands = 0 : i64, tpu.core_type = #tpu.core_type<tc>, window_params = [{transform_indices = @transform_0, window_bounds = array<i64: 16, 32>}, {transform_indices = @transform_1, window_bounds = array<i64: 32, 96>}, {transform_indices = @transform_2, window_bounds = array<i64: 1, 96>}, {transform_indices = @transform_3, window_bounds = array<i64: 16, 96>}]} {
    %c0 = arith.constant 0 : index
    %c0_0 = arith.constant 0 : index
    %0 = vector.load %arg2[%c0, %c0_0] : memref<16x32xf32, #tpu.memory_space<vmem>>, vector<16x32xf32>
    %c0_1 = arith.constant 0 : index
    %c0_2 = arith.constant 0 : index
    %1 = vector.load %arg3[%c0_1, %c0_2] : memref<32x96xf32, #tpu.memory_space<vmem>>, vector<32x96xf32>
    %cst = arith.constant dense<0.000000e+00> : vector<16x96xf32>
    %2 = tpu.matmul %0, %1, %cst {dimension_numbers = #tpu.dot_dimension_numbers<[1], [0], [0], [1], [0, 0, 1, 1], [], []>} : vector<16x32xf32>, vector<32x96xf32>, vector<16x96xf32> -> vector<16x96xf32>
    %c0_3 = arith.constant 0 : index
    %c0_4 = arith.constant 0 : index
    %3 = vector.load %arg4[%c0_3, %c0_4] : memref<1x96xf32, #tpu.memory_space<vmem>>, vector<1x96xf32>
    %4 = vector.broadcast %3 : vector<1x96xf32> to vector<16x96xf32>
    %5 = arith.addf %2, %4 : vector<16x96xf32>
    %c0_5 = arith.constant 0 : index
    %c0_6 = arith.constant 0 : index
    %6 = vector.load %arg5[%c0_5, %c0_6] : memref<16x96xf32, #tpu.memory_space<vmem>>, vector<16x96xf32>
    tpu.vector_store %arg5[%c0_5, %c0_6], %5 {strides = array<i32>} : memref<16x96xf32, #tpu.memory_space<vmem>>, vector<16x96xf32>,
    return
  }
  func.func @transform_0(%arg0: i32, %arg1: i32) -> (i32, i32) {
    %c0_i32 = arith.constant 0 : i32
    %c0_i32_0 = arith.constant 0 : i32
    return %arg0, %c0_i32 : i32, i32
  }
  func.func @transform_1(%arg0: i32, %arg1: i32) -> (i32, i32) {
    %c0_i32 = arith.constant 0 : i32
    %c0_i32_0 = arith.constant 0 : i32
    return %c0_i32, %arg1 : i32, i32
  }
  func.func @transform_2(%arg0: i32, %arg1: i32) -> (i32, i32) {
    %c0_i32 = arith.constant 0 : i32
    %c0_i32_0 = arith.constant 0 : i32
    return %c0_i32, %arg1 : i32, i32
  }
  func.func @transform_3(%arg0: i32, %arg1: i32) -> (i32, i32) {
    %c0_i32 = arith.constant 0 : i32
    return %arg0, %arg1 : i32, i32
  }
}

</mosaic_0001>

<bundles_post_ra>
// kernel: tpu_custom_call.1
= control target key start
LH: loop header
LB: loop body
LE: loop exit
PB: predicated region body
PF: predicated region fallthrough
CT: control target
= control target key end

     0   :  { %8 = vsyncpa [#allocation3], 0  ;;  %s337_s0 = inlined_call_operand.hbm [shape: f32[16,32], index: 0, kind: input, shape index: {}]   ;;  %s338_s1 = inlined_call_operand.hbm [shape: f32[32,96], index: 1, kind: input, shape index: {}]   ;;  %s339_s2 = inlined_call_operand.vmem [shape: f32[1,96], index: 2, kind: input, shape index: {}]   ;;  %s340_s3 = inlined_call_operand.hbm [shape: f32[16,96], index: 3, kind: output, shape index: {}]  }
   0x1   :  { %9 = vsyncpa [#allocation6], 0 }
   0x2   :  { %10 = vsyncpa [#allocation4], 0  ;;  %s264_s12 = smov [#allocation2]   ;;  %s192_s16 = scalar_lea.hbm %s337_s0, 256 }
   0x3   :  { %s16_s13 = sshll.u32 %s264_s12, 4  ;;  %p193_p0 = scmp.ne.s32.totalorder %s337_s0, %s192_s16  ;;  %s17_s13 = int_to_ptr.vmem [resolvable:$true] %s16_s13 }
   0x4   :  { %p196_p1 = scmp.lt.u32.totalorder %s192_s16, %s337_s0 }
   0x6   :  { %p198_p2 = pnand %p196_p1, %p193_p0 }
   0x8   :  { %201 = shalt.err (!%p198_p2)
}
   0x9   :  { %s202_s21 = scalar_lea.vmem %s17_s13, 256  ;;  %p207_p4 = scmp.lt.s32.totalorder %s17_s13, %s17_s13 }
   0xa   :  { %p203_p3 = scmp.ne.s32.totalorder %s17_s13, %s202_s21  ;;  %p208_p5 = scmp.lt.s32.totalorder %s202_s21, %s202_s21 }
   0xc   :  { %p209_p6 = por %p208_p5, %p207_p4 }
   0xe   :  { %p210_p7 = pnand %p209_p6, %p203_p3 }
  0x10   :  { %213 = shalt.err (!%p210_p7)
}
  0x11   :  { %s265_s22 = smov 128   ;;  %s266_s23 = smov 8  }
  0x12   :  { %22 = dma.hbm_to_vmem [thread:$0]  %s337_s0, 256, %s17_s13, [#allocation3], %s265_s22, %s265_s22, %s266_s23  }
  0x13   :  { %s267_s26 = smov [#allocation5]   ;;  %s214_s30 = scalar_lea.hbm %s338_s1, 512 }
  0x14   :  { %s28_s27 = sshll.u32 %s267_s26, 4  ;;  %p215_p8 = scmp.ne.s32.totalorder %s338_s1, %s214_s30  ;;  %s29_s27 = int_to_ptr.vmem [resolvable:$true] %s28_s27 }
  0x15   :  { %p218_p9 = scmp.lt.u32.totalorder %s214_s30, %s338_s1 }
  0x17   :  { %p220_p10 = pnand %p218_p9, %p215_p8 }
  0x19   :  { %223 = shalt.err (!%p220_p10)
}
  0x1a   :  { %s224_s8 = scalar_lea.vmem %s29_s27, 512  ;;  %p229_p12 = scmp.lt.s32.totalorder %s29_s27, %s29_s27 }
  0x1b   :  { %p225_p11 = scmp.ne.s32.totalorder %s29_s27, %s224_s8  ;;  %p230_p13 = scmp.lt.s32.totalorder %s224_s8, %s224_s8 }
  0x1d   :  { %p231_p0 = por %p230_p13, %p229_p12 }
  0x1f   :  { %p232_p1 = pnand %p231_p0, %p225_p11 }
  0x21   :  { %235 = shalt.err (!%p232_p1)
}
  0x22   :  { %34 = dma.hbm_to_vmem [thread:$0]  %s338_s1, 512, %s29_s27, [#allocation6], %s265_s22, %s265_s22, %s266_s23  }
  0x23   :  { %258 = dma.done.wait [#allocation3], 256  }
  0x24   :  { %259 = vsyncadd [#allocation3], 4294967040 }
  0x25   :  { %260 = dma.done.wait [#allocation6], 512  }
  0x26   :  { %261 = vsyncadd [#allocation6], 4294966784  ;;  %vm56_vm0 = vcmask 261120   ;;  %v45_v0 = vld [vmem:[#allocation5] sm:$0xff]  ;;  %v46_v1 = vld [vmem:[#allocation5 + $0x8] sm:$0xff]  ;;  %s268_s11 = smov [#allocation7]  }
  0x27   :  { %v47_v2 = vld [vmem:[#allocation5 + $0x10] sm:$0xff]  ;;  %v179_v3 = vpack.c.bf16 %v46_v1, %v45_v0  ;;  %v48_v4 = vld [vmem:[#allocation5 + $0x18] sm:$0xff]  ;;  %s146_s12 = sshll.u32 %s268_s11, 4  ;;  %vm138_vm1 = vcmask 785408   ;;  %s147_s12 = int_to_ptr.vmem [resolvable:$true] %s146_s12 }
  0x28   :  { %v43_v5 = vld [vmem:[#allocation2] sm:$0xff]  ;;  %v183_v6 = vpack.c.bf16 %v48_v4, %v47_v2  ;;  %v44_v7 = vld [vmem:[#allocation2 + $0x8] sm:$0xff]  ;;  %s236_s13 = scalar_lea.vmem %s147_s12, 256  ;;  %p241_p3 = scmp.lt.s32.totalorder %s147_s12, %s147_s12 }
  0x29   :  { %176 = vmatprep.mubr.msk.f32.mxu0 %vm56_vm0, %v43_v5  ;;  %180 = vmatprep.subr.bf16.mxu0 %v179_v3  ;;  %v159_v8 = vld [vmem:[%s339_s2] ss:$0 sm:$0xff]  ;;  %p237_p2 = scmp.ne.s32.totalorder %s147_s12, %s236_s13  ;;  %p242_p4 = scmp.lt.s32.totalorder %s236_s13, %s236_s13 }
  0x2a   :  { %182 = vmatpush3.bf16.msra.mxu0 %v179_v3 }
  0x2b   :  { %184 = vmatprep.subr.bf16.mxu0 %v183_v6  ;;  %p243_p5 = por %p242_p4, %p241_p3 }
  0x2d   :  { %p244_p6 = pnand %p243_p5, %p237_p2 }
  0x2e   :  { %186 = vmatpush3.bf16.msra.mxu0 %v183_v6 }
  0x31   :  { %177 = vmatmul.mubr.msk.f32.vlgmr.msra.gmra.mrb[0].mxu0 %vm56_vm0, %v44_v7 }
 0x104   :  { %v178_v9 = vpop.f32.mrb[0].mxu0 }
 0x105   :  { %v135_v10 = vadd.f32 %v178_v9, %v159_v8  ;;  %v129_v11 = vpop.f32.mrb[1].mxu0 }
 0x106   :  { %v130_v12 = vadd.f32 %v159_v8, %v129_v11 }
 0x107   :  { %140 = vst.msk [vmem:[#allocation7 + $0x8] sm:$0xff] %vm138_vm1, %v135_v10 }
 0x108   :  { %139 = vst.msk [vmem:[#allocation7] sm:$0xff] %vm138_vm1, %v130_v12 }
 0x109   :  { %247 = shalt.err (!%p244_p6)
}
 0x10a   :  { %s248_s2 = scalar_lea.hbm %s340_s3, 256 }
 0x10b   :  { %p249_p7 = scmp.ne.s32.totalorder %s340_s3, %s248_s2  ;;  %p252_p8 = scmp.lt.u32.totalorder %s248_s2, %s340_s3 }
 0x10d   :  { %p254_p9 = pnand %p252_p8, %p249_p7 }
 0x10f   :  { %257 = shalt.err (!%p254_p9)
}
 0x110   :  { %152 = dma.vmem_to_hbm [thread:$0]  %s147_s12, 256, %s340_s3, [#allocation4], %s265_s22, %s265_s22, %s266_s23  }
 0x111   :  { %262 = dma.done.wait [#allocation4], 256  }
 0x112   :  { %263 = vsyncadd [#allocation4], 4294967040 }
 0x113   :  { %156 = vsyncpa [#allocation3], 1 }
 0x114   :  { %157 = vsyncpa [#allocation6], 1 }
 0x115   :  { %158 = vsyncpa [#allocation4], 1 }

</bundles_post_ra>
